<compile_context>
chip_gen: v6e
topology: v6e:2x2x1
jax: 0.10.0
libtpu: 0.0.40
codegen_flags: <defaults>
</compile_context>

<pallas_src>
import functools

import jax
import jax.numpy as jnp
from jax.experimental import pallas as pl
from jax.experimental.pallas import tpu as pltpu


def _visual_extractor_kernel(x_ref, w_ref, b_ref, patch_ref, avg_ref,
                             *, b_tile, p_pad, p_true):
    # x_ref:     (b_tile * p_pad, K_pad)  bf16 im2col rows for b_tile images
    # w_ref:     (K_pad, C)               bf16 flattened conv weight (zero-padded K)
    # b_ref:     (1, C)                   f32 conv bias
    # patch_ref: (b_tile, p_true, C)      patch features, (B, HW, C) layout
    # avg_ref:   (1, b_tile, C)           f32 spatially averaged features
    x = x_ref[...]
    w = w_ref[...]
    bias = b_ref[...]
    feats = jnp.dot(x, w, preferred_element_type=jnp.float32)   # MXU, f32 acc
    feats = jnp.maximum(feats + bias, 0.0)                      # ReLU ends the stage

    c = feats.shape[-1]
    feats3 = feats.reshape(b_tile, p_pad, c)                    # p_pad % 8 == 0: clean

    # Patch output: drop the padded spatial rows in-kernel (no wrapper slice copy).
    patch_ref[...] = feats3[:, :p_true, :].astype(patch_ref.dtype)

    # AvgPool2d over the full H'xW' window == mean over the p_true real rows.
    # Padded im2col rows are exactly zero, so each contributes exactly relu(bias):
    # subtract that correction instead of running a masked select over all rows.
    pad_corr = (p_pad - p_true) * jnp.maximum(bias, 0.0)        # (1, C)
    avg = (jnp.sum(feats3, axis=1) - pad_corr) * (1.0 / p_true)  # (b_tile, C)
    avg_ref[...] = avg.reshape(1, b_tile, c).astype(avg_ref.dtype)


def visual_extractor(images, weight, bias, *, kh=2, kw=2, sh=2, sw=2,
                     b_tile=4, patch_dtype=jnp.bfloat16):
    """images: (B, Cin, H, W) NCHW float32.
       weight: (Cin*kh*kw, C), bias: (1, C).
       Returns (patch_feats (B, H'*W', C), avg_feats (B, C))."""
    B, Cin, H, W = images.shape
    assert H % sh == 0 and W % sw == 0 and kh == sh and kw == sw
    Hout, Wout = H // sh, W // sw
    P = Hout * Wout
    K = Cin * kh * kw
    C = weight.shape[-1]
    P_pad = ((P + 7) // 8) * 8            # sublane-aligned spatial axis (f32 feats)
    K_pad = ((K + 127) // 128) * 128      # lane-dense LHS -> contiguous x DMA

    # rows = b_tile * P_pad must be a multiple of 16 (bf16 sublane packing);
    # P_pad is a multiple of 8, so any even b_tile works.
    assert B % b_tile == 0 and b_tile % 2 == 0
    num_tiles = B // b_tile
    rows = b_tile * P_pad                 # rows per grid step

    # im2col (non-overlapping stride==kernel) — wrapper glue, plain JAX.
    # Cast to bf16 first so the transpose/pad copies move half the bytes.
    x = images.astype(jnp.bfloat16).reshape(B, Cin, Hout, kh, Wout, kw)
    x = x.transpose(0, 2, 4, 1, 3, 5).reshape(B, P, K)
    # Zero-pad spatial axis to P_pad and contraction axis to K_pad; padded rows
    # MUST stay exactly zero (the relu(bias) mean correction relies on it).
    x = jnp.pad(x, ((0, 0), (0, P_pad - P), (0, K_pad - K)))
    x = x.reshape(B * P_pad, K_pad)
    w = jnp.pad(weight.astype(jnp.bfloat16), ((0, K_pad - K), (0, 0)))

    kernel = functools.partial(
        _visual_extractor_kernel, b_tile=b_tile, p_pad=P_pad, p_true=P)

    cost = pl.CostEstimate(
        flops=2 * B * P * K * C,
        transcendentals=0,
        bytes_accessed=(x.size * 2 + w.size * 2 + bias.size * 4
                        + B * P * C * jnp.dtype(patch_dtype).itemsize
                        + B * C * 4),
    )

    patch_feats, avg_tiles = pl.pallas_call(
        kernel,
        out_shape=(
            jax.ShapeDtypeStruct((B, P, C), patch_dtype),
            jax.ShapeDtypeStruct((num_tiles, b_tile, C), jnp.float32),
        ),
        grid=(num_tiles,),
        in_specs=[
            pl.BlockSpec((rows, K_pad), lambda i: (i, 0)),     # contiguous row slab
            pl.BlockSpec((K_pad, C), lambda i: (0, 0)),        # weight resident
            pl.BlockSpec((1, C), lambda i: (0, 0)),            # bias resident
        ],
        out_specs=(
            # Block covers the full (P, C) trailing dims -> legal, no wrapper slice.
            pl.BlockSpec((b_tile, P, C), lambda i: (i, 0, 0)),
            pl.BlockSpec((1, b_tile, C), lambda i: (i, 0, 0)),
        ),
        compiler_params=pltpu.CompilerParams(dimension_semantics=("parallel",)),
        cost_estimate=cost,
    )(x, w, bias)

    avg_feats = avg_tiles.reshape(B, C)   # contiguous reinterpretation (free)
    return patch_feats, avg_feats


if __name__ == "__main__":
    # Small, deterministic shapes: B=16, Cin=3, 14x14 images -> 7x7 feature map,
    # C=128 feature channels (stand-in for ResNet101's 2048).  b_tile=4 gives a
    # 4-step parallel grid: 2 steps per v7x TensorCore (pipelined DMAs), and on
    # single-core v5e/v6e the extra per-step overhead (~0.35 us) is negligible.
    B, Cin, H, W = 16, 3, 14, 14
    kh = kw = sh = sw = 2
    C = 128
    K = Cin * kh * kw

    key = jax.random.PRNGKey(0)
    k_img, k_w, k_b = jax.random.split(key, 3)
    images = jax.random.normal(k_img, (B, Cin, H, W), dtype=jnp.float32)
    weight = jax.random.normal(k_w, (K, C), dtype=jnp.float32) * 0.1
    bias = jax.random.normal(k_b, (1, C), dtype=jnp.float32) * 0.1

    patch_feats, avg_feats = jax.block_until_ready(
        visual_extractor(images, weight, bias, kh=kh, kw=kw, sh=sh, sw=sw, b_tile=4)
    )

    # Pure-JAX f32 reference (same stand-in backbone); bf16 matmul inputs and bf16
    # patch output in the kernel -> loose-ish tolerances.
    Hout, Wout = H // sh, W // sw
    P = Hout * Wout
    x_ref = images.reshape(B, Cin, Hout, kh, Wout, kw)
    x_ref = x_ref.transpose(0, 2, 4, 1, 3, 5).reshape(B, P, K)
    feats_ref = jnp.maximum(jnp.einsum("bpk,kc->bpc", x_ref, weight) + bias, 0.0)
    avg_ref = feats_ref.mean(axis=1)   # == AvgPool2d(7,1,0).squeeze().reshape(-1, C)

    assert patch_feats.shape == (B, P, C)
    assert avg_feats.shape == (B, C)
    assert patch_feats.dtype == jnp.bfloat16
    assert avg_feats.dtype == jnp.float32
    assert jnp.allclose(patch_feats.astype(jnp.float32), feats_ref,
                        atol=3e-2, rtol=3e-2)
    assert jnp.allclose(avg_feats, avg_ref, atol=2e-2, rtol=2e-2)

    print("KERNEL_OK")
</pallas_src>

<mosaic_0001>
module attributes {stable_mosaic.version = 11 : i64} {
  func.func @_visual_extractor_kernel(%arg0: i32, %arg1: memref<224x128xbf16, #tpu.memory_space<vmem>>, %arg2: memref<128x128xbf16, #tpu.memory_space<vmem>>, %arg3: memref<1x128xf32, #tpu.memory_space<vmem>>, %arg4: memref<4x49x128xbf16, #tpu.memory_space<vmem>>, %arg5: memref<1x4x128xf32, #tpu.memory_space<vmem>>) attributes {dimension_semantics = [#tpu.dimension_semantics<parallel>], iteration_bounds = array<i64: 4>, scalar_prefetch = 0 : i64, scratch_operands = 0 : i64, tpu.core_type = #tpu.core_type<tc>, window_params = [{transform_indices = @transform_0, window_bounds = array<i64: 224, 128>}, {pipeline_mode = #tpu.pipeline_mode<synchronous>, transform_indices = @transform_1, window_bounds = array<i64: 128, 128>}, {pipeline_mode = #tpu.pipeline_mode<synchronous>, transform_indices = @transform_2, window_bounds = array<i64: 1, 128>}, {transform_indices = @transform_3, window_bounds = array<i64: 4, 49, 128>}, {transform_indices = @transform_4, window_bounds = array<i64: 1, 4, 128>}]} {
    %c0 = arith.constant 0 : index
    %c0_0 = arith.constant 0 : index
    %0 = vector.load %arg1[%c0, %c0_0] : memref<224x128xbf16, #tpu.memory_space<vmem>>, vector<224x128xbf16>
    %c0_1 = arith.constant 0 : index
    %c0_2 = arith.constant 0 : index
    %1 = vector.load %arg2[%c0_1, %c0_2] : memref<128x128xbf16, #tpu.memory_space<vmem>>, vector<128x128xbf16>
    %c0_3 = arith.constant 0 : index
    %c0_4 = arith.constant 0 : index
    %2 = vector.load %arg3[%c0_3, %c0_4] : memref<1x128xf32, #tpu.memory_space<vmem>>, vector<1x128xf32>
    %cst = arith.constant dense<0.000000e+00> : vector<224x128xf32>
    %3 = tpu.matmul %0, %1, %cst {dimension_numbers = #tpu.dot_dimension_numbers<[1], [0], [0], [1], [0, 0, 1, 1], [], []>} : vector<224x128xbf16>, vector<128x128xbf16>, vector<224x128xf32> -> vector<224x128xf32>
    %4 = vector.broadcast %2 : vector<1x128xf32> to vector<224x128xf32>
    %5 = arith.addf %3, %4 : vector<224x128xf32>
    %cst_5 = arith.constant 0.000000e+00 : f32
    %6 = vector.broadcast %cst_5 : f32 to vector<224x128xf32>
    %7 = arith.maximumf %5, %6 : vector<224x128xf32>
    %8 = vector.shape_cast %7 : vector<224x128xf32> to vector<4x56x128xf32>
    %9 = vector.extract_strided_slice %8 {offsets = [0, 0, 0], sizes = [4, 49, 128], strides = [1, 1, 1]} : vector<4x56x128xf32> to vector<4x49x128xf32>
    %10 = arith.truncf %9 : vector<4x49x128xf32> to vector<4x49x128xbf16>
    %c0_6 = arith.constant 0 : index
    %c0_7 = arith.constant 0 : index
    %c0_8 = arith.constant 0 : index
    %11 = vector.load %arg4[%c0_6, %c0_7, %c0_8] : memref<4x49x128xbf16, #tpu.memory_space<vmem>>, vector<4x49x128xbf16>
    tpu.vector_store %arg4[%c0_6, %c0_7, %c0_8], %10 {strides = array<i32>} : memref<4x49x128xbf16, #tpu.memory_space<vmem>>, vector<4x49x128xbf16>,
    %cst_9 = arith.constant 0.000000e+00 : f32
    %12 = vector.broadcast %cst_9 : f32 to vector<1x128xf32>
    %13 = arith.maximumf %2, %12 : vector<1x128xf32>
    %cst_10 = arith.constant 7.000000e+00 : f32
    %14 = vector.broadcast %cst_10 : f32 to vector<1x128xf32>
    %15 = arith.mulf %14, %13 : vector<1x128xf32>
    %cst_11 = arith.constant dense<0.000000e+00> : vector<4x128xf32>
    %16 = vector.multi_reduction <add>, %8, %cst_11 [1] : vector<4x56x128xf32> to vector<4x128xf32>
    %17 = vector.broadcast %15 : vector<1x128xf32> to vector<4x128xf32>
    %18 = arith.subf %16, %17 : vector<4x128xf32>
    %cst_12 = arith.constant 0.0204081628 : f32
    %19 = vector.broadcast %cst_12 : f32 to vector<4x128xf32>
    %20 = arith.mulf %18, %19 : vector<4x128xf32>
    %21 = vector.shape_cast %20 : vector<4x128xf32> to vector<1x4x128xf32>
    %c0_13 = arith.constant 0 : index
    %c0_14 = arith.constant 0 : index
    %c0_15 = arith.constant 0 : index
    %22 = vector.load %arg5[%c0_13, %c0_14, %c0_15] : memref<1x4x128xf32, #tpu.memory_space<vmem>>, vector<1x4x128xf32>
    tpu.vector_store %arg5[%c0_13, %c0_14, %c0_15], %21 {strides = array<i32>} : memref<1x4x128xf32, #tpu.memory_space<vmem>>, vector<1x4x128xf32>,
    return
  }
  func.func @transform_0(%arg0: i32) -> (i32, i32) {
    %c0_i32 = arith.constant 0 : i32
    %c0_i32_0 = arith.constant 0 : i32
    return %arg0, %c0_i32 : i32, i32
  }
  func.func @transform_1(%arg0: i32) -> (i32, i32) {
    %c0_i32 = arith.constant 0 : i32
    %c0_i32_0 = arith.constant 0 : i32
    %c0_i32_1 = arith.constant 0 : i32
    return %c0_i32, %c0_i32_0 : i32, i32
  }
  func.func @transform_2(%arg0: i32) -> (i32, i32) {
    %c0_i32 = arith.constant 0 : i32
    %c0_i32_0 = arith.constant 0 : i32
    %c0_i32_1 = arith.constant 0 : i32
    return %c0_i32, %c0_i32_0 : i32, i32
  }
  func.func @transform_3(%arg0: i32) -> (i32, i32, i32) {
    %c0_i32 = arith.constant 0 : i32
    %c0_i32_0 = arith.constant 0 : i32
    %c0_i32_1 = arith.constant 0 : i32
    return %arg0, %c0_i32, %c0_i32_0 : i32, i32, i32
  }
  func.func @transform_4(%arg0: i32) -> (i32, i32, i32) {
    %c0_i32 = arith.constant 0 : i32
    %c0_i32_0 = arith.constant 0 : i32
    %c0_i32_1 = arith.constant 0 : i32
    return %arg0, %c0_i32, %c0_i32_0 : i32, i32, i32
  }
}

</mosaic_0001>

<bundles_post_ra>
// kernel: tpu_custom_call.1
= control target key start
LH: loop header
LB: loop body
LE: loop exit
PB: predicated region body
PF: predicated region fallthrough
CT: control target
= control target key end

     0   :  { %10 = vsyncpa [#allocation3], 0  ;;  %s1755_s0 = inlined_call_operand.hbm [shape: bf16[896,128], index: 0, kind: input, shape index: {}]   ;;  %s1756_s1 = inlined_call_operand.hbm [shape: bf16[128,128], index: 1, kind: input, shape index: {}]   ;;  %s1757_s2 = inlined_call_operand.vmem [shape: f32[1,128], index: 2, kind: input, shape index: {}]   ;;  %s1758_s3 = inlined_call_operand.vmem [shape: bf16[16,49,128], index: 3, kind: output, shape index: {0}]   ;;  %s1759_s4 = inlined_call_operand.hbm [shape: f32[4,4,128], index: 4, kind: output, shape index: {1}]  }
   0x1   :  { %12 = vsyncpa [#allocation3 + $0x1], 0 }
   0x2   :  { %13 = vsyncpa [#allocation6], 0 }
   0x3   :  { %14 = vsyncpa [#allocation4], 0 }
   0x4   :  { %16 = vsyncpa [#allocation4 + $0x1], 0  ;;  %s1441_s15 = smov 0   ;;  %s1443_s16 = smov 0  }
   0x5   :  { %s1445_s17 = smov 0   ;;  %s1447_s18 = smov 0  }
   0x6 LB: > { %s1462_s19 = sadd.s32 4294967295, %s1409_s18   ;;  %s969_s20 = sadd.s32 4294967294, %s1409_s18   ;;  %s1409_s18 = sphi %s1447_s18, %s1782_s18   ;;  %s1405_s17 = sphi %s1445_s17, %s1781_s17   ;;  %s1401_s16 = sphi %s1443_s16, %s1780_s16   ;;  %s1397_s15 = sphi %s1441_s15, %s1779_s15  }
   0x7   : > { %p42_p0 = scmp.ne.s32.totalorder %s1401_s16, %s1397_s15  ;;  %p1760_p1 = scmp.eq.s32.totalorder %s1462_s19, 0 }
   0x8   : > { %p140_p3 = scmp.eq.s32.totalorder %s969_s20, 3  ;;  %p970_p5 = scmp.ge.s32.totalorder %s1409_s18, 1 }
   0x9   : > { %p1471_p4 = por %p1760_p1, %p42_p0  ;;  %p147_p7 = scmp.lt.s32.totalorder %s1409_s18, 5 }
   0xa   : > { %p1476_p6 = por %p140_p3, %p42_p0  ;;  %s1411_s24 = smov [#allocation5]  }
   0xb   : > { %s1764_s21 = scalar_select %p1471_p4, 1, 0 }
   0xc   : > { %s1765_s22 = scalar_select %p1476_p6, 1, 0 }
   0xd   : > { %p1481_p8 = pnand %p970_p5, %p147_p7  ;;  %s159_s25 = sshll.u32 %s1411_s24, 4  ;;  %s160_s25 = int_to_ptr.vmem [resolvable:$true] %s159_s25 }
   0xe   : > { %s1494_s27 = sadd.s32 1, %s1409_s18   ;;  %s29_s28 = sadd.s32 1, %s1405_s17 }
   0xf   : > { %s1766_s23 = scalar_select %p1481_p8, 1, 0 }
  0x10   : > { %p1214_p9 = pneg %p1481_p8  ;;  %s26_s29 = ssub.s32 %s1409_s18, %s1494_s27 }
  0x11   : > { %s1298_s30 = scalar_lea.vmem %s160_s25, 1024  ;;  %p1306_p3 = scmp.lt.s32.totalorder %s160_s25, %s160_s25 }
  0x12   : > { %p1489_p10 = pnand %p1214_p9, %p1760_p1  ;;  %p1299_p12 = scmp.ne.s32.totalorder %s160_s25, %s1298_s30 }
  0x13   : > { %p1307_p5 = scmp.lt.s32.totalorder %s1298_s30, %s1298_s30 }
  0x14   : > { %p1289_p11 = pneg %p1489_p10 }
  0x15   : > { %p1308_p7 = por %p1307_p5, %p1306_p3 }
  0x16   : > { %p1301_p13 = pnand %p1299_p12, %p1289_p11 }
  0x18   : > { %p1302_p0 = pneg %p1301_p13 }
  0x1a   : > { %p1309_p2 = pnand %p1308_p7, %p1302_p0 }
  0x1c   : > { %1312 = shalt.err (!%p1309_p2)
}
  0x1d   : > { %s1412_s5 = smov 64   ;;  %s1413_s6 = smov 4  }
  0x1e   : > { %1217 = dma.hbm_to_vmem [thread:$0]  (!%p1489_p10), %s1756_s1, 1024, %s160_s25, [#allocation6], %s1412_s5, %s1412_s5, %s1413_s6  }
  0x1f   : > { %p27_p2 = scmp.eq.s32.totalorder %s26_s29, 0  ;;  %p36_p9 = scmp.ne.s32.totalorder %s1405_s17, %s1401_s16 }
  0x20   : > { %p37_p11 = scmp.eq.s32.totalorder %s1409_s18, 0  ;;  %p1227_p12 = scmp.lt.s32.totalorder %s1409_s18, 4 }
  0x21   : > { %s1514_s9 = scalar_select %p27_p2, %s1405_s17, %s29_s28  }
  0x22   : > { %p38_p13 = por %p37_p11, %p36_p9  ;;  %p1768_p0 = scmp.eq.s32.totalorder %s1462_s19, 3 }
  0x23   : > { %s176_s11 = sand.u32 1, %s1405_s17   ;;  %s1033_s12 = smul.u32 1792, %s1409_s18 }
  0x24   : > { %p1518_p3 = por %p1768_p0, %p36_p9  ;;  %s1203_s13 = smul.u32 112, %s176_s11 }
  0x25   : > { %p1524_p5 = pnand %p1227_p12, %p38_p13  ;;  %s1531_s25 = scalar_lea.hbm %s1755_s0, %s1033_s12 }
  0x26   : > { %s1769_s10 = scalar_select %p1518_p3, 1, 0 }
  0x27   : > { %s180_s26 = scalar_lea.vmem [#allocation2], %s1203_s13  ;;  %s1535_s29 = scalar_lea.sflag [#allocation3], %s176_s11 }
  0x28   : > { %s187_s28 = sshll.u32 %s180_s26, 4  ;;  %s1313_s30 = scalar_lea.hbm %s1531_s25, 1792  ;;  %s1533_s28 = int_to_ptr.vmem [resolvable:$true] %s187_s28 }
  0x29   : > { %p1314_p10 = scmp.ne.s32.totalorder %s1531_s25, %s1313_s30  ;;  %p1315_p7 = pneg %p1524_p5 }
  0x2a   : > { %s1318_s12 = scalar_lea.hbm %s1755_s0, 7168  ;;  %p1319_p11 = scmp.lt.s32.totalorder %s1531_s25, %s1755_s0 }
  0x2b   : > { %p1316_p2 = pnand %p1315_p7, %p1314_p10  ;;  %p1320_p12 = scmp.lt.s32.totalorder %s1318_s12, %s1313_s30 }
  0x2d   : > { %p1317_p9 = pneg %p1316_p2  ;;  %p1321_p13 = por %p1320_p12, %p1319_p11 }
  0x2f   : > { %p1322_p0 = pnand %p1321_p13, %p1317_p9 }
  0x31   : > { %1325 = shalt.err (!%p1322_p0)
}
  0x32   : > { %s1326_s11 = scalar_lea.vmem %s1533_s28, 1792  ;;  %s1414_s13 = smov [#allocation2]  }
  0x33   : > { %p1327_p1 = scmp.ne.s32.totalorder %s1533_s28, %s1326_s11  ;;  %s1331_s26 = sshll.u32 %s1414_s13, 4  ;;  %s1332_s26 = int_to_ptr.vmem [resolvable:$false] %s1331_s26 }
  0x34   : > { %s1333_s7 = scalar_lea.vmem %s1332_s26, 3584  ;;  %p1334_p2 = scmp.lt.s32.totalorder %s1533_s28, %s1332_s26 }
  0x35   : > { %p1329_p6 = pnand %p1327_p1, %p1315_p7  ;;  %p1335_p3 = scmp.lt.s32.totalorder %s1333_s7, %s1326_s11 }
  0x37   : > { %p1330_p10 = pneg %p1329_p6  ;;  %p1336_p4 = por %p1335_p3, %p1334_p2 }
  0x39   : > { %p1337_p8 = pnand %p1336_p4, %p1330_p10 }
  0x3b   : > { %1340 = shalt.err (!%p1337_p8)
}
  0x3c   : > { %1221 = dma.hbm_to_vmem [thread:$0]  (!%p1524_p5), %s1531_s25, 1792, %s1533_s28, %s1535_s29, %s1412_s5, %s1412_s5, %s1413_s6  }
  0x3d   : > { %p1771_p1 = scmp.ne.s32.totalorder %s1766_s23, 0 }
  0x3e   : > { %s1562_s30 = sand.u32 (!%p1771_p1), 1, %s1401_s16   ;;  %p1772_p4 = scmp.ne.s32.totalorder (!%p1771_p1), %s1764_s21, 0 }
  0x3f   : > { %199 = sbr.rel (%p1771_p1) target bundleno = 375 (0x177), region = 32  ;;  %s202_s12 = scalar_lea.sflag (!%p1771_p1), [#allocation3], %s1562_s30 }
  0x40   : > { %s1204_s8 = smul.u32 (!%p1771_p1), 112, %s1562_s30 }
  0x42   : > { %s1566_s20 = scalar_lea.vmem (!%p1771_p1), [#allocation2], %s1204_s8 }
  0x44   : > { %1384 = dma.done.wait (%p1772_p4), %s202_s12, 1792  }
  0x45   : > { %1386 = vsyncadd (%p1772_p4), %s202_s12, 4294965504  ;;  %p1773_p6 = scmp.eq.s32.totalorder %s1462_s19, 0 }
  0x47   : > { %1388 = dma.done.wait (%p1773_p6), [#allocation6], 1024   ;;  %p1774_p8 = pmov %p1773_p6 }
  0x48   : > { %v1265_v0 = vld [vmem:[#allocation5 + $0x38] sm:$0xff]   ;;  %v1266_v1 = vld [vmem:[#allocation5 + $0x30] sm:$0xff]   ;;  %v1267_v2 = vld [vmem:[#allocation5 + $0x28] sm:$0xff]   ;;  %v295_v22 = vlaneseq  ;;  %s977_s21 = sshll.u32 %s1462_s19, 2  ;;  %vm727_vm0 = vcmask 1040384   ;;  %s976_s29 = sshll.u32 %s1562_s30, 2 }
  0x49   : > { %1390 = vsyncadd (%p1774_p8), [#allocation6], 4294966272  ;;  %1143 = vmatprep.subr.bf16.mxu0 %v1265_v0  ;;  %1187 = vmatprep.subr.bf16.mxu1 %v1265_v0  ;;  %v1268_v3 = vld [vmem:[#allocation5 + $0x20] sm:$0xff]   ;;  %v1269_v6 = vld [vmem:[#allocation5 + $0x18] sm:$0xff]   ;;  %p242_p3 = scmp.lt.s32.totalorder %s977_s21, 15  ;;  %vm829_vm3 = vcmask 1041409  }
  0x4a   : > { %1144 = vmatpush3.bf16.msra.mxu0 %v1265_v0  ;;  %1195 = vmatpush3.bf16.msra.mxu1 %v1265_v0  ;;  %v1273_v4 = vld [vmem:[%s1566_s20] sm:$0xff]   ;;  %v1271_v8 = vld [vmem:[#allocation5 + $0x8] sm:$0xff]   ;;  %v1277_v12 = vld [vmem:[%s1566_s20 + $0x10] sm:$0xff]   ;;  %v1590_v23 = vshrl.u32 %v295_v22, 7  ;;  %vm728_vm1 = vsmask.f32 256 }
  0x4b   : > { %1145 = vmatprep.subr.bf16.mxu0 %v1266_v1  ;;  %1188 = vmatprep.subr.bf16.mxu1 %v1266_v1  ;;  %v1274_v5 = vld [vmem:[%s1566_s20 + $0x40] sm:$0xff]   ;;  %v1275_v10 = vld [vmem:[%s1566_s20 + $0x8] sm:$0xff]   ;;  %v1278_v13 = vld [vmem:[%s1566_s20 + $0x50] sm:$0xff]   ;;  %s1784_s21 = smov (!%p242_p3, %s977_s21), 15  ;;  %vm832_vm4 = vcmask 1042434   ;;  %s1030_s24 = sshll.u32 %s1462_s19, 6 }
  0x4c   : > { %1159 = vmatprep.mubr.bf16.mxu0 %v1273_v4  ;;  %1175 = vmatprep.mubr.bf16.mxu1 %v1274_v5  ;;  %v1270_v7 = vld [vmem:[#allocation5 + $0x10] sm:$0xff]   ;;  %v1272_v9 = vld [vmem:[#allocation5] sm:$0xff]   ;;  %v1276_v11 = vld [vmem:[%s1566_s20 + $0x48] sm:$0xff]   ;;  %v297_v24 = vsub.s32 0, %v1590_v23  ;;  %s1205_s6 = smul.u32 28, %s1784_s21  ;;  %s239_s11 = scalar_lea.vmem [#allocation7], %s976_s29 }
  0x4d   : > { %v1279_v14 = vld [vmem:[%s1566_s20 + $0x18] sm:$0xff]   ;;  %v1281_v16 = vld [vmem:[%s1566_s20 + $0x20] sm:$0xff]   ;;  %v1283_v18 = vld [vmem:[%s1566_s20 + $0x28] sm:$0xff]   ;;  %s863_s13 = sshll.u32 %s239_s11, 4  ;;  %vm835_vm5 = vcmask 1043459   ;;  %s1719_s8 = scalar_lea.hbm %s1759_s4, %s1030_s24  ;;  %s864_s13 = int_to_ptr.vmem [resolvable:$true] %s863_s13 }
  0x4e   : > { %1146 = vmatpush3.bf16.msra.mxu0 %v1266_v1  ;;  %1196 = vmatpush3.bf16.msra.mxu1 %v1266_v1  ;;  %v1280_v15 = vld [vmem:[%s1566_s20 + $0x58] sm:$0xff]   ;;  %v1282_v17 = vld [vmem:[%s1566_s20 + $0x60] sm:$0xff]   ;;  %v1284_v19 = vld [vmem:[%s1566_s20 + $0x68] sm:$0xff]   ;;  %s1626_s28 = scalar_lea.vmem %s1758_s3, %s1205_s6  ;;  %s846_s12 = scalar_lea.sflag [#allocation4], %s1562_s30 }
  0x4f   : > { %1147 = vmatprep.subr.bf16.mxu0 %v1267_v2  ;;  %1189 = vmatprep.subr.bf16.mxu1 %v1267_v2  ;;  %v1285_v20 = vld [vmem:[%s1566_s20 + $0x30] sm:$0xff]   ;;  %v1286_v21 = vld [vmem:[%s1566_s20 + $0x38] sm:$0xff]   ;;  %vm1649_vm2 = vmand %vm727_vm0, %vm728_vm1  ;;  %s1341_s20 = scalar_lea.vmem %s864_s13, 64  ;;  %p1777_p7 = scmp.ne.s32.totalorder %s1769_s10, 0 }
  0x50   : > { %v1597_v25 = vld [vmem:[%s1757_s2] sm:$0x1]  ;;  %v730_v5 = vld [vmem:[%s1626_s28 + $0x18] sm:$0x1]  ;;  %p1342_p5 = scmp.ne.s32.totalorder %s864_s13, %s1341_s20  ;;  %s1415_s19 = smov [#allocation7]  }
  0x51   : > { %v1602_v26 = vrot.slane %v1597_v25, %v297_v24  ;;  %s1345_s21 = sshll.u32 %s1415_s19, 4  ;;  %s1346_s21 = int_to_ptr.vmem [resolvable:$false] %s1345_s21 }
  0x52   : > { %1148 = vmatpush3.bf16.msra.mxu0 %v1267_v2  ;;  %1197 = vmatpush3.bf16.msra.mxu1 %v1267_v2  ;;  %p1343_p9 = pnand %p1342_p5, %p1777_p7  ;;  %s1347_s23 = scalar_lea.vmem %s1346_s21, 128 }
  0x53   : > { %1149 = vmatprep.subr.bf16.mxu0 %v1268_v3  ;;  %1190 = vmatprep.subr.bf16.mxu1 %v1268_v3  ;;  %p1348_p12 = scmp.lt.s32.totalorder %s864_s13, %s1346_s21  ;;  %p1349_p13 = scmp.lt.s32.totalorder %s1347_s23, %s1341_s20 }
  0x54   : > { %p1344_p11 = pneg %p1343_p9 }
  0x55   : > { %p1350_p0 = por %p1349_p13, %p1348_p12 }
  0x56   : > { %1150 = vmatpush3.bf16.msra.mxu0 %v1268_v3  ;;  %1198 = vmatpush3.bf16.msra.mxu1 %v1268_v3 }
  0x57   : > { %1151 = vmatprep.subr.bf16.mxu0 %v1269_v6  ;;  %1191 = vmatprep.subr.bf16.mxu1 %v1269_v6  ;;  %p1351_p10 = pnand %p1350_p0, %p1344_p11 }
  0x5a   : > { %1152 = vmatpush3.bf16.msra.mxu0 %v1269_v6  ;;  %1199 = vmatpush3.bf16.msra.mxu1 %v1269_v6 }
  0x5b   : > { %1153 = vmatprep.subr.bf16.mxu0 %v1270_v7  ;;  %1192 = vmatprep.subr.bf16.mxu1 %v1270_v7 }
  0x5e   : > { %1154 = vmatpush3.bf16.msra.mxu0 %v1270_v7  ;;  %1200 = vmatpush3.bf16.msra.mxu1 %v1270_v7 }
  0x5f   : > { %1155 = vmatprep.subr.bf16.mxu0 %v1271_v8  ;;  %1193 = vmatprep.subr.bf16.mxu1 %v1271_v8 }
  0x62   : > { %1156 = vmatpush3.bf16.msra.mxu0 %v1271_v8  ;;  %1201 = vmatpush3.bf16.msra.mxu1 %v1271_v8 }
  0x63   : > { %1157 = vmatprep.subr.bf16.mxu0 %v1272_v9  ;;  %1194 = vmatprep.subr.bf16.mxu1 %v1272_v9 }
  0x66   : > { %1158 = vmatpush3.bf16.msra.mxu0 %v1272_v9  ;;  %1202 = vmatpush3.bf16.msra.mxu1 %v1272_v9 }
  0x69   : > { %1160 = vmatmul.mubr.bf16.vlgmr.msra.gmra.mxu0 %v1275_v10  ;;  %1176 = vmatmul.mubr.bf16.vlgmr.msra.gmra.mxu1 %v1276_v11 }
  0x6a   : > { %1163 = vmatprep.mubr.bf16.mxu0 %v1277_v12  ;;  %1179 = vmatprep.mubr.bf16.mxu1 %v1278_v13 }
  0x71   : > { %1164 = vmatmul.mubr.bf16.gmra.mxu0 %v1279_v14  ;;  %1180 = vmatmul.mubr.bf16.gmra.mxu1 %v1280_v15  ;;  %v748_v14 = vld [vmem:[%s1626_s28 + $0x50] sm:$0x1] }
  0x72   : > { %1167 = vmatprep.mubr.bf16.mxu0 %v1281_v16  ;;  %1183 = vmatprep.mubr.bf16.mxu1 %v1282_v17 }
  0x79   : > { %1168 = vmatmul.mubr.bf16.gmra.mxu0 %v1283_v18  ;;  %1184 = vmatmul.mubr.bf16.gmra.mxu1 %v1284_v19 }
  0x7a   : > { %1171 = vmatprep.mubr.bf16.mxu0 %v1285_v20 }
  0x81   : > { %1172 = vmatmul.mubr.bf16.gmra.mxu0 %v1286_v21 }
 0x129   : > { %v1161_v27 = vpop.f32.mrf.mxu0  ;;  %v1177_v28 = vpop.f32.mrf.mxu1 }
 0x12a   : > { %v1605_v29 = vadd.f32 %v1177_v28, %v1602_v26  ;;  %v475_v30 = vadd.f32 %v1161_v27, %v1602_v26 }
 0x12b   : > { %v466_v31 = vpop.f32.mrf.mxu0  ;;  %v530_v32 = vpop.f32.mrf.mxu1 }
 0x12c   : > { %v1609_v33 = vadd.f32 %v530_v32, %v1602_v26  ;;  %v467_v34 = vadd.f32 %v466_v31, %v1602_v26  ;;  %v595_v37 = vmax.f32 %v1605_v29, 0.0  ;;  %v579_v40 = vmax.f32 %v475_v30, 0.0 }
 0x12d   : > { %v1162_v35 = vpop.f32.mrf.mxu0  ;;  %v1178_v36 = vpop.f32.mrf.mxu1 }
 0x12e   : > { %v478_v38 = vadd.f32 %v1162_v35, %v1602_v26  ;;  %v1615_v39 = vadd.f32 %v1178_v36, %v1602_v26  ;;  %v593_v41 = vmax.f32 %v1609_v33, 0.0  ;;  %v577_v48 = vmax.f32 %v467_v34, 0.0 }
 0x12f   : > { %v469_v42 = vpop.f32.mrf.mxu0  ;;  %v533_v43 = vpop.f32.mrf.mxu1  ;;  %v760_v33 = vmax.f32 %v1597_v25, 0.0 }
 0x130   : > { %v580_v44 = vmax.f32 %v478_v38, 0.0  ;;  %v596_v45 = vmax.f32 %v1615_v39, 0.0  ;;  %v470_v46 = vadd.f32 %v469_v42, %v1602_v26  ;;  %v1621_v47 = vadd.f32 %v533_v43, %v1602_v26 }
 0x131   : > { %v1165_v49 = vpop.f32.mrf.mxu0  ;;  %v1181_v50 = vpop.f32.mrf.mxu1 }
 0x132   : > { %v1070_v51 = vpack.c.bf16 %v580_v44, %v579_v40  ;;  %v1100_v52 = vpack.c.bf16 %v596_v45, %v595_v37  ;;  %v578_v53 = vmax.f32 %v470_v46, 0.0  ;;  %v594_v54 = vmax.f32 %v1621_v47, 0.0 }
 0x133   : > { %v491_v55 = vadd.f32 %v1165_v49, %v1602_v26  ;;  %v555_v56 = vadd.f32 %v1181_v50, %v1602_v26  ;;  %v482_v57 = vpop.f32.mrf.mxu0  ;;  %v546_v58 = vpop.f32.mrf.mxu1 }
 0x134   : > { %1112 = vst [vmem:[%s1626_s28 + $0x8] sm:$0xff] %v1070_v51   ;;  %1118 = vst [vmem:[%s1626_s28 + $0x48] sm:$0xff] %v1100_v52   ;;  %v1065_v59 = vpack.c.bf16 %v578_v53, %v577_v48  ;;  %v762_v60 = vadd.f32 %v578_v53, %v577_v48  ;;  %v1095_v61 = vpack.c.bf16 %v594_v54, %v593_v41 }
 0x135   : > { %v1641_v62 = vmax.f32 %v491_v55, 0.0  ;;  %v483_v63 = vadd.f32 %v482_v57, %v1602_v26  ;;  %v547_v0 = vadd.f32 %v546_v58, %v1602_v26  ;;  %v1166_v1 = vpop.f32.mrf.mxu0  ;;  %v1182_v2 = vpop.f32.mrf.mxu1  ;;  %v599_v9 = vmax.f32 %v555_v56, 0.0 }
 0x136   : > { %1066 = vst [vmem:[%s1626_s28] sm:$0xff] %v1065_v59   ;;  %v763_v3 = vadd.f32 %v762_v60, %v579_v40  ;;  %1117 = vst [vmem:[%s1626_s28 + $0x40] sm:$0xff] %v1095_v61   ;;  %v494_v6 = vadd.f32 %v1166_v1, %v1602_v26  ;;  %v558_v7 = vadd.f32 %v1182_v2, %v1602_v26 }
 0x137   : > { %v1040_v8 = vpack.c.bf16 %v1641_v62, %v1641_v62  ;;  %v1658_v10 = vmax.f32 %v547_v0, 0.0  ;;  %v485_v11 = vpop.f32.mrf.mxu0  ;;  %v549_v12 = vpop.f32.mrf.mxu1  ;;  %v581_v19 = vmax.f32 %v483_v63, 0.0 }
 0x138   : > { %v764_v13 = vadd.f32 %v763_v3, %v580_v44  ;;  %v584_v15 = vmax.f32 %v494_v6, 0.0  ;;  %v600_v16 = vmax.f32 %v558_v7, 0.0  ;;  %v486_v17 = vadd.f32 %v485_v11, %v1602_v26  ;;  %v757_v11 = vld [vmem:[%s1626_s28 + $0x6c] sm:$0x1] }
 0x139   : > { %v731_v18 = vsel %vm1649_vm2, %v1040_v8, %v730_v5  ;;  %v1054_v20 = vpack.c.bf16 %v1658_v10, %v1658_v10  ;;  %v550_v21 = vadd.f32 %v549_v12, %v1602_v26  ;;  %v1169_v22 = vpop.f32.mrf.mxu0  ;;  %v1185_v27 = vpop.f32.mrf.mxu1 }
 0x13a   : > { %732 = vst [vmem:[%s1626_s28 + $0x18] sm:$0x1] %v731_v18  ;;  %v1041_v28 = vpack.c.bf16 %v584_v15, %v584_v15  ;;  %v1105_v30 = vpack.c.bf16 %v600_v16, %v599_v9  ;;  %v582_v31 = vmax.f32 %v486_v17, 0.0  ;;  %v765_v32 = vadd.f32 %v764_v13, %v581_v19 }
 0x13b   : > { %v749_v34 = vsel %vm1649_vm2, %v1054_v20, %v748_v14  ;;  %v598_v35 = vmax.f32 %v550_v21, 0.0  ;;  %v571_v36 = vadd.f32 %v1185_v27, %v1602_v26  ;;  %v498_v38 = vpop.f32.mrf.mxu0  ;;  %v562_v40 = vpop.f32.mrf.mxu1  ;;  %v507_v43 = vadd.f32 %v1169_v22, %v1602_v26 }
 0x13c   : > { %750 = vst [vmem:[%s1626_s28 + $0x50] sm:$0x1] %v749_v34  ;;  %733 = vst [vmem:[%s1626_s28 + $0x1c] sm:$0xf] %v1041_v28  ;;  %v1075_v42 = vpack.c.bf16 %v582_v31, %v581_v19  ;;  %v499_v44 = vadd.f32 %v498_v38, %v1602_v26  ;;  %v563_v46 = vadd.f32 %v562_v40, %v1602_v26 }
 0x13d   : > { %1119 = vst [vmem:[%s1626_s28 + $0x58] sm:$0xff] %v1105_v30   ;;  %v1055_v48 = vpack.c.bf16 %v598_v35, %v598_v35  ;;  %v798_v49 = vadd.f32 %v599_v9, %v598_v35  ;;  %v603_v50 = vmax.f32 %v571_v36, 0.0  ;;  %v1170_v51 = vpop.f32.mrf.mxu0  ;;  %v1186_v52 = vpop.f32.mrf.mxu1  ;;  %v766_v63 = vadd.f32 %v765_v32, %v582_v31 }
 0x13e   : > { %1113 = vst [vmem:[%s1626_s28 + $0x10] sm:$0xff] %v1075_v42   ;;  %v585_v53 = vmax.f32 %v499_v44, 0.0  ;;  %v601_v55 = vmax.f32 %v563_v46, 0.0  ;;  %v510_v56 = vadd.f32 %v1170_v51, %v1602_v26  ;;  %v574_v59 = vadd.f32 %v1186_v52, %v1602_v26 }
 0x13f   : > { %751 = vst [vmem:[%s1626_s28 + $0x54] sm:$0xf] %v1055_v48  ;;  %v1060_v57 = vpack.c.bf16 %v603_v50, %v603_v50  ;;  %v799_v58 = vadd.f32 %v798_v49, %v600_v16  ;;  %v501_v60 = vpop.f32.mrf.mxu0  ;;  %v565_v61 = vpop.f32.mrf.mxu1  ;;  %v587_v0 = vmax.f32 %v507_v43, 0.0  ;;  %v767_v17 = vadd.f32 %v766_v63, %v1641_v62 }
 0x140   : > { %v588_v1 = vmax.f32 %v510_v56, 0.0  ;;  %v502_v2 = vadd.f32 %v501_v60, %v1602_v26  ;;  %v604_v5 = vmax.f32 %v574_v59, 0.0  ;;  %v566_v6 = vadd.f32 %v565_v61, %v1602_v26 }
 0x141   : > { %756 = vst [vmem:[%s1626_s28 + $0x68] sm:$0xf] %v1060_v57  ;;  %v800_v3 = vadd.f32 %v799_v58, %v601_v55  ;;  %v1173_v7 = vpop.f32.mrf.mxu0  ;;  %v774_v8 = vadd.f32 %v585_v53, %v584_v15  ;;  %v768_v42 = vrot.slane %v767_v17, 4 }
 0x142   : > { %v1085_v9 = vpack.c.bf16 %v588_v1, %v587_v0  ;;  %v586_v12 = vmax.f32 %v502_v2, 0.0  ;;  %v1061_v13 = vpack.c.bf16 %v604_v5, %v604_v5  ;;  %v602_v14 = vmax.f32 %v566_v6, 0.0 }
 0x143   : > { %v514_v16 = vpop.f32.mrf.mxu0  ;;  %v523_v20 = vadd.f32 %v1173_v7, %v1602_v26 }
 0x144   : > { %1115 = vst [vmem:[%s1626_s28 + $0x28] sm:$0xff] %v1085_v9   ;;  %v1080_v18 = vpack.c.bf16 %v586_v12, %v585_v53  ;;  %v775_v19 = vadd.f32 %v774_v8, %v586_v12  ;;  %v758_v21 = vsel %vm1649_vm2, %v1061_v13, %v757_v11  ;;  %v1110_v15 = vpack.c.bf16 %v602_v14, %v601_v55  ;;  %v739_v53 = vld [vmem:[%s1626_s28 + $0x34] sm:$0x1] }
 0x145   : > { %v801_v22 = vadd.f32 %v800_v3, %v602_v14  ;;  %v515_v27 = vadd.f32 %v514_v16, %v1602_v26  ;;  %v1174_v28 = vpop.f32.mrf.mxu0  ;;  %759 = vst [vmem:[%s1626_s28 + $0x6c] sm:$0x1] %v758_v21  ;;  %v591_v35 = vmax.f32 %v523_v20, 0.0  ;;  %v769_v55 = vadd.f32 %v768_v42, %v767_v17 }
 0x146   : > { %1114 = vst [vmem:[%s1626_s28 + $0x20] sm:$0xff] %v1080_v18   ;;  %v776_v30 = vadd.f32 %v775_v19, %v587_v0  ;;  %v526_v31 = vadd.f32 %v1174_v28, %v1602_v26  ;;  %1120 = vst [vmem:[%s1626_s28 + $0x60] sm:$0xff] %v1110_v15  }
 0x147   : > { %v802_v62 = vadd.f32 %v801_v22, %v603_v50  ;;  %v589_v32 = vmax.f32 %v515_v27, 0.0  ;;  %v517_v34 = vpop.f32.mrf.mxu0 }
 0x148   : > { %v777_v36 = vadd.f32 %v776_v30, %v588_v1  ;;  %v592_v38 = vmax.f32 %v526_v31, 0.0  ;;  %v518_v40 = vadd.f32 %v517_v34, %v1602_v26 }
 0x149   : > { %v803_v43 = vadd.f32 %v802_v62, %v604_v5  ;;  %v1046_v44 = vpack.c.bf16 %v589_v32, %v589_v32 }
 0x14a   : > { %v778_v46 = vadd.f32 %v777_v36, %v589_v32  ;;  %v1090_v48 = vpack.c.bf16 %v592_v38, %v591_v35  ;;  %v786_v49 = vadd.f32 %v592_v38, %v591_v35  ;;  %v590_v52 = vmax.f32 %v518_v40, 0.0 }
 0x14b   : > { %v804_v51 = vrot.slane %v803_v43, 4  ;;  %738 = vst [vmem:[%s1626_s28 + $0x30] sm:$0xf] %v1046_v44 }
 0x14c   : > { %1116 = vst [vmem:[%s1626_s28 + $0x38] sm:$0xff] %v1090_v48   ;;  %v787_v50 = vadd.f32 %v786_v49, %v593_v41  ;;  %v1047_v57 = vpack.c.bf16 %v590_v52, %v590_v52  ;;  %v779_v58 = vadd.f32 %v778_v46, %v590_v52  ;;  %v770_v41 = vrot.slane %v769_v55, 2 }
 0x14d   : > { %v805_v56 = vadd.f32 %v804_v51, %v803_v43 }
 0x14e   : > { %v788_v26 = vadd.f32 %v787_v50, %v594_v54  ;;  %v740_v60 = vsel %vm1649_vm2, %v1047_v57, %v739_v53  ;;  %v780_v61 = vrot.slane %v779_v58, 4  ;;  %v761_v54 = vmul.f32 7.0, %v760_v33 }
 0x14f   : > { %v806_v59 = vrot.slane %v805_v56, 2  ;;  %741 = vst [vmem:[%s1626_s28 + $0x34] sm:$0x1] %v740_v60  ;;  %v771_v5 = vadd.f32 %v770_v41, %v769_v55 }
 0x150   : > { %v789_v63 = vadd.f32 %v788_v26, %v595_v37  ;;  %v781_v0 = vadd.f32 %v780_v61, %v779_v58  ;;  %v814_v25 = vrot.slane %v761_v54, %v297_v24 }
 0x151   : > { %v807_v2 = vadd.f32 %v806_v59, %v805_v56  ;;  %v772_v8 = vrot.slane %v771_v5, 1 }
 0x152   : > { %v790_v1 = vadd.f32 %v789_v63, %v596_v45  ;;  %v782_v3 = vrot.slane %v781_v0, 2 }
 0x153   : > { %v808_v7 = vrot.slane %v807_v2, 1  ;;  %v773_v13 = vadd.f32 %v772_v8, %v771_v5 }
 0x154   : > { %v791_v47 = vadd.f32 %v790_v1, %v1658_v10  ;;  %v783_v4 = vadd.f32 %v782_v3, %v781_v0 }
 0x155   : > { %v809_v39 = vadd.f32 %v808_v7, %v807_v2  ;;  %v816_v18 = vsub.f32 %v773_v13, %v814_v25 }
 0x156   : > { %v792_v6 = vrot.slane %v791_v47, 4  ;;  %v784_v29 = vrot.slane %v783_v4, 1 }
 0x157   : > { %v819_v16 = vsub.f32 %v809_v39, %v814_v25  ;;  %v820_v23 = vmul.f32 0.020408163, %v816_v18 }
 0x158   : > { %v793_v37 = vadd.f32 %v792_v6, %v791_v47  ;;  %v785_v9 = vadd.f32 %v784_v29, %v783_v4 }
 0x159   : > { %v823_v21 = vmul.f32 0.020408163, %v819_v16 }
 0x15a   : > { %v794_v11 = vrot.slane %v793_v37, 2  ;;  %v817_v45 = vsub.f32 %v785_v9, %v814_v25 }
 0x15b   : > { %v834_v27 = vrot.slane %v823_v21, 5 }
 0x15c   : > { %v795_v12 = vadd.f32 %v794_v11, %v793_v37  ;;  %v821_v14 = vmul.f32 0.020408163, %v817_v45 }
 0x15e   : > { %v796_v10 = vrot.slane %v795_v12, 1  ;;  %v828_v20 = vrot.slane %v821_v14, 7 }
 0x160   : > { %v797_v17 = vadd.f32 %v796_v10, %v795_v12  ;;  %v830_v22 = vsel %vm829_vm3, %v828_v20, %v820_v23 }
 0x162   : > { %v818_v19 = vsub.f32 %v797_v17, %v814_v25 }
 0x164   : > { %v822_v15 = vmul.f32 0.020408163, %v818_v19 }
 0x166   : > { %v831_v24 = vrot.slane %v822_v15, 6 }
 0x168   : > { %v833_v28 = vsel %vm832_vm4, %v831_v24, %v830_v22 }
 0x169   : > { %v836_v30 = vsel %vm835_vm5, %v834_v27, %v833_v28 }
 0x16a   : > { %838 = vst [vmem:[%s239_s11] sm:$0xf] %v836_v30 }
 0x16b   : > { %1354 = shalt.err (!%p1351_p10)
}
 0x16c   : > { %s1355_s5 = scalar_lea.hbm %s1719_s8, 64  ;;  %s1359_s14 = scalar_lea.hbm %s1759_s4, 256 }
 0x16d   : > { %p1356_p2 = scmp.ne.s32.totalorder %s1719_s8, %s1355_s5  ;;  %p1360_p6 = scmp.lt.s32.totalorder %s1719_s8, %s1759_s4 }
 0x16e   : > { %p1361_p8 = scmp.lt.s32.totalorder %s1359_s14, %s1355_s5 }
 0x16f   : > { %p1357_p1 = pnand %p1356_p2, %p1777_p7 }
 0x170   : > { %p1362_p3 = por %p1361_p8, %p1360_p6 }
 0x171   : > { %p1358_p4 = pneg %p1357_p1 }
 0x173   : > { %p1363_p5 = pnand %p1362_p3, %p1358_p4 }
 0x175   : > { %1366 = shalt.err (!%p1363_p5)
}
 0x176   : > { %1212 = dma.vmem_to_hbm [thread:$0]  (%p1777_p7), %s864_s13, 64, %s1719_s8, %s846_s12  }
 0x177 PF: > { %p1229_p9 = scmp.ge.s32.totalorder %s1409_s18, 2  ;;  %s884_s29 = sand.u32 1, %s1397_s15  }
 0x178   : > { %p1778_p11 = scmp.ne.s32.totalorder %s1765_s22, 0  ;;  %s885_s24 = scalar_lea.sflag [#allocation4], %s884_s29 }
 0x17a   : > { %p1223_p12 = pnand %p1229_p9, %p1778_p11 }
 0x17c   : > { %p1224_p13 = pneg %p1223_p12 }
 0x17e   : > { %1392 = dma.done.wait (%p1224_p13), %s885_s24, 64  }
 0x17f   : > { %1394 = vsyncadd (%p1224_p13), %s885_s24, 4294967232  ;;  %p19_p0 = scmp.ge.s32.totalorder %s1494_s27, 6   ;;  %s1779_s15 = smov %s1401_s16 }
 0x180   : > { %s1780_s16 = smov %s1405_s17  ;;  %s1781_s17 = smov %s1514_s9 }
 0x181   : > { %s1782_s18 = smov %s1494_s27  ;;  %21 = sbr.rel (!%p19_p0) target bundleno = 6 (0x6), region = 93 }
 0x186   :  { %890 = vsyncpa [#allocation3], 1 }
 0x187   :  { %892 = vsyncpa [#allocation3 + $0x1], 1 }
 0x188   :  { %893 = vsyncpa [#allocation6], 1 }
 0x189   :  { %894 = vsyncpa [#allocation4], 1 }
 0x18a   :  { %896 = vsyncpa [#allocation4 + $0x1], 1 }

</bundles_post_ra>
